<compile_context>
chip_gen: v7x
topology: tpu7x:2x2x1
jax: 0.10.0
libtpu: 0.0.40
codegen_flags: <defaults>
</compile_context>

<pallas_src>
import functools

import jax
import jax.numpy as jnp
from jax.experimental import pallas as pl
from jax.experimental.pallas import tpu as pltpu


def _round_up(v, m):
    return (v + m - 1) // m * m


def _pick_tile(dim_pad, max_tile):
    """Largest multiple of 128 that divides dim_pad and is <= max_tile."""
    best = 128
    t = 128
    while t <= min(max_tile, dim_pad):
        if dim_pad % t == 0:
            best = t
        t += 128
    return best


def _matmul_kernel(x_ref, w_ref, o_ref):
    """o[B, tn] (+)= x[k, B, tk] @ w[tk, tn].

    x_ref is the whole resident LHS (K_pad//tk, B, tk); the K chunk is selected
    in-kernel so x is DMA'd exactly once for the whole grid.
    o_ref doubles as the f32 accumulator: its block index is constant along the
    K grid axis (last, 'arbitrary'), so it stays resident in VMEM across the
    reduction and is written back only when the N block changes.
    """
    k = pl.program_id(1)

    @pl.when(k == 0)
    def _():
        o_ref[...] = jnp.zeros_like(o_ref)

    o_ref[...] += jnp.dot(
        x_ref[k], w_ref[...], preferred_element_type=jnp.float32
    )


@functools.partial(jax.jit, static_argnames=("dims",))
def _panel_matmul(x, w_panels, dims):
    """out[B, N] = x[B, K] @ W[K, N] with f32 accumulation.

    w_panels: panel-contiguous weights, shape (N_pad//tn, K_pad, tn).
    dims: (K, N, K_pad, N_pad, tk, tn) — static.
    """
    K, N, K_pad, N_pad, tk, tn = dims
    B = x.shape[0]
    nk = K_pad // tk
    nn = N_pad // tn

    x = x.astype(w_panels.dtype)
    if K_pad > K:
        x = jnp.pad(x, ((0, 0), (0, K_pad - K)))
    # Resident LHS layout: (nk, B, tk); loaded into VMEM once.
    x_panels = x.reshape(B, nk, tk).transpose(1, 0, 2)

    out = pl.pallas_call(
        _matmul_kernel,
        out_shape=jax.ShapeDtypeStruct((B, N_pad), jnp.float32),
        # Reduction axis (K) MUST stay last / "arbitrary": the output block is
        # the accumulator and its index must be constant along it.
        grid=(nn, nk),
        in_specs=[
            pl.BlockSpec((nk, B, tk), lambda n, k: (0, 0, 0)),   # resident x
            pl.BlockSpec((None, tk, tn), lambda n, k: (n, k, 0)),  # contiguous W block
        ],
        out_specs=pl.BlockSpec((B, tn), lambda n, k: (0, n)),
        compiler_params=pltpu.CompilerParams(
            dimension_semantics=("parallel", "arbitrary"),
            vmem_limit_bytes=32 * 1024 * 1024,
        ),
    )(x_panels, w_panels)

    return out[:, :N] if N < N_pad else out


def _prepare_weight(w, weight_dtype, max_tile, panel_vmem_bytes):
    """Pad W[K, N] to 128 multiples, pick tiles, and store panel-contiguous.

    Returns (w_panels[(N_pad//tn), K_pad, tn], dims) where dims is the static
    tuple consumed by _panel_matmul.
    """
    K, N = w.shape
    K_pad = _round_up(K, 128)
    N_pad = _round_up(N, 128)
    tk = _pick_tile(K_pad, max_tile)

    itemsize = jnp.dtype(weight_dtype).itemsize
    # Full-width row panels (tn = N_pad) when the double-buffered panel fits.
    if 2 * tk * N_pad * itemsize <= panel_vmem_bytes:
        tn = N_pad
    else:
        tn = _pick_tile(N_pad, max_tile)
    nn = N_pad // tn

    w = w.astype(weight_dtype)
    if K_pad > K or N_pad > N:
        w = jnp.pad(w, ((0, K_pad - K), (0, N_pad - N)))
    # Panel-contiguous layout: each (tk, tn) block is one contiguous HBM read.
    w_panels = w.reshape(K_pad, nn, tn).transpose(1, 0, 2)
    return w_panels, (K, N, K_pad, N_pad, tk, tn)


class LinearOperator:
    """Concrete dense linear operator: forward = A @ vec(x), adjoint = A^T @ y.

    forward/adjoint accept batched inputs; batching many solver vectors into
    one call amortises the weight stream and is the largest available win.
    """

    def __init__(self, a_matrix, image_shape, *, weight_dtype=jnp.bfloat16,
                 max_tile=512, panel_vmem_bytes=8 * 1024 * 1024,
                 precompute_gramian=False):
        # a_matrix: [M, N] with N = C*H*W
        M, N = a_matrix.shape
        self.M, self.N = M, N
        self.image_shape = tuple(image_shape)

        # forward:  y[B, M] = vec(x)[B, N] @ A^T[N, M]
        self._w_fwd, self._dims_fwd = _prepare_weight(
            jnp.transpose(a_matrix), weight_dtype, max_tile, panel_vmem_bytes)

        # adjoint:  z[B, N] = y[B, M] @ A[M, N]
        self._w_adj, self._dims_adj = _prepare_weight(
            a_matrix, weight_dtype, max_tile, panel_vmem_bytes)

        # Optional fast gramian: G = A^T A streamed once (N^2 bytes vs 2*M*N).
        self._w_gram = None
        if precompute_gramian:
            gram = jnp.dot(jnp.transpose(a_matrix), a_matrix)   # [N, N], f32
            self._w_gram, self._dims_gram = _prepare_weight(
                gram, weight_dtype, max_tile, panel_vmem_bytes)

    def forward(self, x):
        # x: [B, C, H, W] -> y: [B, M]
        B = x.shape[0]
        x_flat = x.reshape(B, -1)   # NCHW row-major flatten (torch.reshape semantics)
        return _panel_matmul(x_flat, self._w_fwd, self._dims_fwd)

    def adjoint(self, y):
        # y: [B, M] -> x: [B, C, H, W]
        B = y.shape[0]
        z = _panel_matmul(y, self._w_adj, self._dims_adj)
        return z.reshape((B,) + self.image_shape)

    def gramian(self, x):
        if self._w_gram is not None:
            B = x.shape[0]
            g = _panel_matmul(x.reshape(B, -1), self._w_gram, self._dims_gram)
            return g.reshape((B,) + self.image_shape)
        # Exactly the base-class composition: adjoint(forward(x)).
        return self.adjoint(self.forward(x))


if __name__ == "__main__":
    # M deliberately not 128-aligned and N not a power-of-two tile multiple,
    # to exercise 128-padding + non-trivial tile selection (K=768 -> tk=384).
    B, C, H, W = 2, 3, 16, 16
    N = C * H * W          # 768
    M = 400                # measurement dimension

    key = jax.random.PRNGKey(0)
    kx, ka = jax.random.split(key)
    x = jax.random.normal(kx, (B, C, H, W), dtype=jnp.float32)
    A = jax.random.normal(ka, (M, N), dtype=jnp.float32) / jnp.sqrt(N)

    op = LinearOperator(A, (C, H, W))

    y = op.forward(x)          # [B, M]
    ax = op.adjoint(y)         # [B, C, H, W]
    g = op.gramian(x)          # adjoint(forward(x))
    jax.block_until_ready((y, ax, g))

    # References with the identical dtype flow (bf16 operands, f32 accumulation).
    A_bf = A.astype(jnp.bfloat16)
    x_flat = x.reshape(B, -1)
    y_ref = jnp.dot(x_flat.astype(jnp.bfloat16), A_bf.T,
                    preferred_element_type=jnp.float32)
    ax_ref = jnp.dot(y_ref.astype(jnp.bfloat16), A_bf,
                     preferred_element_type=jnp.float32).reshape(B, C, H, W)

    assert jnp.allclose(y, y_ref, atol=1e-2, rtol=1e-2), "forward mismatch"
    assert jnp.allclose(ax, ax_ref, atol=1e-2, rtol=1e-2), "adjoint mismatch"
    assert jnp.allclose(g, ax_ref, atol=1e-2, rtol=1e-2), "gramian mismatch"

    # Precomputed-Gramian fast path (G = A^T A streamed once).
    op_g = LinearOperator(A, (C, H, W), precompute_gramian=True)
    g2 = op_g.gramian(x)
    G_bf = jnp.dot(A.T, A).astype(jnp.bfloat16)
    g2_ref = jnp.dot(x_flat.astype(jnp.bfloat16), G_bf,
                     preferred_element_type=jnp.float32).reshape(B, C, H, W)
    assert jnp.allclose(g2, g2_ref, atol=5e-2, rtol=2e-2), "precomputed gramian mismatch"

    # Force the tiled-N (panel-contiguous) fallback path with a tiny budget and
    # check it against the same references.
    op_t = LinearOperator(A, (C, H, W), panel_vmem_bytes=4096)
    y_t = op_t.forward(x)
    ax_t = op_t.adjoint(y)
    jax.block_until_ready((g2, y_t, ax_t))
    assert jnp.allclose(y_t, y_ref, atol=1e-2, rtol=1e-2), "tiled forward mismatch"
    assert jnp.allclose(ax_t, ax_ref, atol=1e-2, rtol=1e-2), "tiled adjoint mismatch"

    print("KERNEL_OK")
</pallas_src>

<mosaic_0001>
module attributes {stable_mosaic.version = 11 : i64} {
  func.func @_matmul_kernel(%arg0: i32, %arg1: i32, %arg2: memref<2x2x384xbf16, #tpu.memory_space<vmem>>, %arg3: memref<1x384x512xbf16, #tpu.memory_space<vmem>>, %arg4: memref<2x512xf32, #tpu.memory_space<vmem>>) attributes {dimension_semantics = [#tpu.dimension_semantics<parallel>, #tpu.dimension_semantics<arbitrary>], iteration_bounds = array<i64: 1, 2>, scalar_prefetch = 0 : i64, scratch_operands = 0 : i64, tpu.core_type = #tpu.core_type<tc>, window_params = [{pipeline_mode = #tpu.pipeline_mode<synchronous>, transform_indices = @transform_0, window_bounds = array<i64: 2, 2, 384>}, {transform_indices = @transform_1, window_bounds = array<i64: 1, 384, 512>}, {transform_indices = @transform_2, window_bounds = array<i64: 2, 512>}]} {
    %c0_i32 = arith.constant 0 : i32
    %0 = arith.cmpi eq, %arg1, %c0_i32 : i32
    %1 = arith.extui %0 : i1 to i32
    %c0_i32_0 = arith.constant 0 : i32
    %2 = arith.cmpi ne, %1, %c0_i32_0 : i32
    scf.if %2 {
      %cst_9 = arith.constant 0.000000e+00 : f32
      %12 = vector.broadcast %cst_9 : f32 to vector<2x512xf32>
      %c0_10 = arith.constant 0 : index
      %c0_11 = arith.constant 0 : index
      %13 = vector.load %arg4[%c0_10, %c0_11] : memref<2x512xf32, #tpu.memory_space<vmem>>, vector<2x512xf32>
      tpu.vector_store %arg4[%c0_10, %c0_11], %12 {strides = array<i32>} : memref<2x512xf32, #tpu.memory_space<vmem>>, vector<2x512xf32>,
    } else {
    }
    %c0 = arith.constant 0 : index
    %c0_1 = arith.constant 0 : index
    %3 = vector.load %arg4[%c0, %c0_1] : memref<2x512xf32, #tpu.memory_space<vmem>>, vector<2x512xf32>
    %4 = arith.index_cast %arg1 : i32 to index
    %c0_2 = arith.constant 0 : index
    %c0_3 = arith.constant 0 : index
    %5 = vector.load %arg2[%4, %c0_2, %c0_3] : memref<2x2x384xbf16, #tpu.memory_space<vmem>>, vector<1x2x384xbf16>
    %6 = vector.shape_cast %5 : vector<1x2x384xbf16> to vector<2x384xbf16>
    %c0_4 = arith.constant 0 : index
    %c0_5 = arith.constant 0 : index
    %c0_6 = arith.constant 0 : index
    %7 = vector.load %arg3[%c0_4, %c0_5, %c0_6] : memref<1x384x512xbf16, #tpu.memory_space<vmem>>, vector<1x384x512xbf16>
    %8 = vector.shape_cast %7 : vector<1x384x512xbf16> to vector<384x512xbf16>
    %cst = arith.constant dense<0.000000e+00> : vector<2x512xf32>
    %9 = tpu.matmul %6, %8, %cst {dimension_numbers = #tpu.dot_dimension_numbers<[1], [0], [0], [1], [0, 0, 1, 1], [], []>} : vector<2x384xbf16>, vector<384x512xbf16>, vector<2x512xf32> -> vector<2x512xf32>
    %10 = arith.addf %3, %9 : vector<2x512xf32>
    %c0_7 = arith.constant 0 : index
    %c0_8 = arith.constant 0 : index
    %11 = vector.load %arg4[%c0_7, %c0_8] : memref<2x512xf32, #tpu.memory_space<vmem>>, vector<2x512xf32>
    tpu.vector_store %arg4[%c0_7, %c0_8], %10 {strides = array<i32>} : memref<2x512xf32, #tpu.memory_space<vmem>>, vector<2x512xf32>,
    return
  }
  func.func @transform_0(%arg0: i32, %arg1: i32) -> (i32, i32, i32) {
    %c0_i32 = arith.constant 0 : i32
    %c0_i32_0 = arith.constant 0 : i32
    %c0_i32_1 = arith.constant 0 : i32
    %c0_i32_2 = arith.constant 0 : i32
    return %c0_i32, %c0_i32_0, %c0_i32_1 : i32, i32, i32
  }
  func.func @transform_1(%arg0: i32, %arg1: i32) -> (i32, i32, i32) {
    %c0_i32 = arith.constant 0 : i32
    %c0_i32_0 = arith.constant 0 : i32
    return %arg0, %arg1, %c0_i32 : i32, i32, i32
  }
  func.func @transform_2(%arg0: i32, %arg1: i32) -> (i32, i32) {
    %c0_i32 = arith.constant 0 : i32
    %c0_i32_0 = arith.constant 0 : i32
    return %c0_i32, %arg0 : i32, i32
  }
}

</mosaic_0001>

<bundles_post_ra>
// kernel: _panel_matmul.1
= control target key start
LH: loop header
LB: loop body
LE: loop exit
PB: predicated region body
PF: predicated region fallthrough
CT: control target
= control target key end

     0   :  { %7 = vsyncpa [#allocation3], 0  ;;  %s1775_s0 = inlined_call_operand.vmem [shape: bf16[2,2,384], index: 0, kind: input, shape index: {}]   ;;  %s1776_s1 = inlined_call_operand.hbm [shape: bf16[1,768,512], index: 1, kind: input, shape index: {}]   ;;  %s1777_s2 = inlined_call_operand.hbm [shape: f32[2,512], index: 2, kind: output, shape index: {}]  }
   0x1   :  { %9 = vsyncpa [#allocation3 + $0x1], 0 }
   0x2   :  { %10 = vsyncpa [#allocation4], 0  ;;  %s1519_s9 = smov 0   ;;  %s1521_s10 = smov 0  }
   0x3   :  { %s1523_s11 = smov 0   ;;  %s1525_s12 = smov 0  }
   0x4   :  { %s1527_s13 = smov 0   ;;  %s1529_s14 = smov 0  }
   0x5 LB: > { %s1051_s15 = sadd.s32 4294967295, %s1494_s14   ;;  %s25_s16 = sadd.s32 1, %s1490_s13  ;;  %s1494_s14 = sphi %s1529_s14, %s16_s14   ;;  %s1490_s13 = sphi %s1527_s13, %s1785_s13   ;;  %s1486_s12 = sphi %s1525_s12, %s1784_s12   ;;  %s1482_s11 = sphi %s1523_s11, %s1783_s11   ;;  %s1478_s10 = sphi %s1521_s10, %s1782_s10   ;;  %s1474_s9 = sphi %s1519_s9, %s1781_s9  }
   0x6   : > { %p26_p0 = scmp.ge.s32.totalorder %s25_s16, 2  ;;  %s58_s17 = sadd.s32 1, %s1482_s11 }
   0x7   : > { %p65_p1 = scmp.ne.s32.totalorder %s1482_s11, %s1478_s10  ;;  %p66_p2 = scmp.eq.s32.totalorder %s1494_s14, 0 }
   0x8   : > { %s1787_s16 = smov (%p26_p0, %s25_s16), 0  ;;  %p71_p4 = scmp.ne.s32.totalorder %s1478_s10, %s1474_s9 }
   0x9   : > { %p67_p3 = por %p66_p2, %p65_p1  ;;  %s54_s18 = ssub.s32 %s1490_s13, %s1787_s16 }
   0xa   : > { %p72_p5 = scmp.eq.s32.totalorder %s1051_s15, 0  ;;  %p56_p6 = scmp.eq.s32.totalorder %s54_s18, 0 }
   0xb   : > { %p1182_p8 = scmp.lt.s32.totalorder %s1494_s14, 2  ;;  %s124_s21 = sand.u32 1, %s1482_s11  }
   0xc   : > { %p1560_p7 = por %p72_p5, %p71_p4  ;;  %s1161_s22 = smul.u32 12288, %s1490_s13 }
   0xd   : > { %s1566_s20 = scalar_select %p56_p6, %s1482_s11, %s58_s17  }
   0xe   : > { %s1170_s23 = smul.u32 768, %s124_s21  ;;  %s1573_s26 = scalar_lea.hbm %s1776_s1, %s1161_s22 }
   0xf   : > { %p1575_p9 = pnand %p1182_p8, %p67_p3  ;;  %s1581_s30 = scalar_lea.sflag [#allocation3], %s124_s21 }
  0x10   : > { %s128_s28 = scalar_lea.vmem [#allocation2], %s1170_s23  ;;  %s1384_s3 = scalar_lea.hbm %s1573_s26, 12288 }
  0x11   : > { %s138_s29 = sshll.u32 %s128_s28, 4  ;;  %p1385_p10 = scmp.ne.s32.totalorder %s1573_s26, %s1384_s3  ;;  %s1579_s29 = int_to_ptr.vmem [resolvable:$true] %s138_s29 }
  0x12   : > { %p1386_p11 = pneg %p1575_p9  ;;  %s1389_s6 = scalar_lea.hbm %s1776_s1, 24576 }
  0x13   : > { %p1390_p0 = scmp.lt.u32.totalorder %s1573_s26, %s1776_s1  ;;  %p1391_p1 = scmp.lt.u32.totalorder %s1389_s6, %s1384_s3 }
  0x14   : > { %p1387_p12 = pnand %p1386_p11, %p1385_p10  ;;  %p1393_p3 = scmp.lt.u32.totalorder %s1384_s3, %s1573_s26 }
  0x15   : > { %p1392_p2 = por %p1391_p1, %p1390_p0 }
  0x16   : > { %p1388_p13 = pneg %p1387_p12 }
  0x17   : > { %p1394_p4 = por %p1393_p3, %p1392_p2 }
  0x19   : > { %p1395_p5 = pnand %p1394_p4, %p1388_p13 }
  0x1b   : > { %1398 = shalt.err (!%p1395_p5)
}
  0x1c   : > { %s1399_s9 = scalar_lea.vmem %s1579_s29, 12288  ;;  %s1496_s17 = smov [#allocation2]  }
  0x1d   : > { %p1400_p6 = scmp.ne.s32.totalorder %s1579_s29, %s1399_s9  ;;  %s1404_s18 = sshll.u32 %s1496_s17, 4  ;;  %s1405_s18 = int_to_ptr.vmem [resolvable:$false] %s1404_s18 }
  0x1e   : > { %s1406_s21 = scalar_lea.vmem %s1405_s18, 24576  ;;  %p1407_p12 = scmp.lt.s32.totalorder %s1579_s29, %s1405_s18 }
  0x1f   : > { %p1402_p8 = pnand %p1400_p6, %p1386_p11  ;;  %p1408_p0 = scmp.lt.s32.totalorder %s1406_s21, %s1399_s9 }
  0x21   : > { %p1403_p10 = pneg %p1402_p8  ;;  %p1409_p1 = por %p1408_p0, %p1407_p12 }
  0x23   : > { %p1410_p2 = pnand %p1409_p1, %p1403_p10 }
  0x25   : > { %1413 = shalt.err (!%p1410_p2)
}
  0x26   : > { %s1497_s22 = smov 256   ;;  %s1498_s23 = smov 16  }
  0x27   : > { %1181 = dma.hbm_to_vmem [thread:$0]  (!%p1575_p9), %s1573_s26, 12288, %s1579_s29, %s1581_s30, %s1497_s22, %s1497_s22, %s1498_s23  }
  0x28   : > { %p1056_p11 = scmp.ge.s32.totalorder %s1494_s14, 1  ;;  %p146_p13 = scmp.lt.s32.totalorder %s1494_s14, 3 }
  0x2a   : > { %p147_p3 = pnand %p1056_p11, %p146_p13 }
  0x2b   : > { %s152_s24 = sand.u32 (!%p147_p3), 1, %s1478_s10  }
  0x2c   : > { %150 = sbr.rel (%p147_p3) target bundleno = 394 (0x18a), region = 28  ;;  %s153_s28 = scalar_lea.sflag (!%p147_p3), [#allocation3], %s152_s24 }
  0x2d   : > { %s1171_s25 = smul.u32 (!%p147_p3), 768, %s152_s24 }
  0x2f   : > { %s1612_s3 = scalar_lea.vmem (!%p147_p3), [#allocation2], %s1171_s25 }
  0x33   : > { %1465 = dma.done.wait (%p1560_p7), %s153_s28, 12288  }
  0x34   : > { %1467 = vsyncadd (%p1560_p7), %s153_s28, 4294955008  ;;  %p1057_p4 = scmp.ne.s32.totalorder %s1486_s12, 0 }
  0x35   : > { %v1499_v0 = vmov (!%p1057_p4), 0.0  }
  0x36   : > { %178 = sbr.rel (%p1057_p4) target bundleno = 61 (0x3d), region = 36  ;;  %179 = vst [vmem:[#allocation5] sm:$0xff] (!%p1057_p4), %v1499_v0 }
  0x3d PF: > { %v1240_v1 = vld [vmem:[%s1612_s3 + $0x4] ss:$16 sps:$4 sm:$0xff]   ;;  %v1242_v2 = vld [vmem:[%s1612_s3 + $0xc] ss:$16 sps:$4 sm:$0xff]   ;;  %v1244_v3 = vld [vmem:[%s1612_s3] ss:$16 sps:$4 sm:$0xff]   ;;  %v292_v41 = vlaneseq }
  0x3e   : > { %787 = vmatprep.subr.bf16.mxu0 %v1240_v1  ;;  %v1245_v4 = vld [vmem:[%s1612_s3 + $0x8] ss:$16 sps:$4 sm:$0xff]   ;;  %869 = vmatprep.subr.bf16.mxu1 %v1242_v2  ;;  %v1246_v5 = vld [vmem:[%s1612_s3 + $0x24] ss:$16 sps:$4 sm:$0xff]   ;;  %v1248_v6 = vld [vmem:[%s1612_s3 + $0x2c] ss:$16 sps:$4 sm:$0xff]  }
  0x3f   : > { %788 = vmatpush1.bf16.msra.mxu0 %v1244_v3  ;;  %870 = vmatpush1.bf16.msra.mxu1 %v1245_v4  ;;  %v1250_v7 = vld [vmem:[%s1612_s3 + $0x20] ss:$16 sps:$4 sm:$0xff]   ;;  %v1251_v8 = vld [vmem:[%s1612_s3 + $0x28] ss:$16 sps:$4 sm:$0xff]   ;;  %v1252_v9 = vld [vmem:[%s1612_s3 + $0x44] ss:$16 sps:$4 sm:$0xff]  }
  0x40   : > { %789 = vmatprep.subr.bf16.mxu0 %v1246_v5  ;;  %871 = vmatprep.subr.bf16.mxu1 %v1248_v6  ;;  %v1254_v10 = vld [vmem:[%s1612_s3 + $0x4c] ss:$16 sps:$4 sm:$0xff]   ;;  %v1256_v11 = vld [vmem:[%s1612_s3 + $0x40] ss:$16 sps:$4 sm:$0xff]   ;;  %v1257_v12 = vld [vmem:[%s1612_s3 + $0x48] ss:$16 sps:$4 sm:$0xff]  }
  0x41   : > { %v1258_v13 = vld [vmem:[%s1612_s3 + $0x64] ss:$16 sps:$4 sm:$0xff]   ;;  %v1260_v14 = vld [vmem:[%s1612_s3 + $0x6c] ss:$16 sps:$4 sm:$0xff]   ;;  %v1262_v15 = vld [vmem:[%s1612_s3 + $0x60] ss:$16 sps:$4 sm:$0xff]  }
  0x42   : > { %v1263_v16 = vld [vmem:[%s1612_s3 + $0x68] ss:$16 sps:$4 sm:$0xff]   ;;  %v1264_v17 = vld [vmem:[%s1612_s3 + $0x84] ss:$16 sps:$4 sm:$0xff]   ;;  %v1266_v18 = vld [vmem:[%s1612_s3 + $0x8c] ss:$16 sps:$4 sm:$0xff]  }
  0x43   : > { %790 = vmatpush1.bf16.msra.mxu0 %v1250_v7  ;;  %872 = vmatpush1.bf16.msra.mxu1 %v1251_v8  ;;  %v1268_v19 = vld [vmem:[%s1612_s3 + $0x80] ss:$16 sps:$4 sm:$0xff]   ;;  %v1269_v20 = vld [vmem:[%s1612_s3 + $0x88] ss:$16 sps:$4 sm:$0xff]   ;;  %v1270_v21 = vld [vmem:[%s1612_s3 + $0xa4] ss:$16 sps:$4 sm:$0xff]  }
  0x44   : > { %791 = vmatprep.subr.bf16.mxu0 %v1252_v9  ;;  %873 = vmatprep.subr.bf16.mxu1 %v1254_v10  ;;  %v1272_v22 = vld [vmem:[%s1612_s3 + $0xac] ss:$16 sps:$4 sm:$0xff]   ;;  %v1274_v23 = vld [vmem:[%s1612_s3 + $0xa0] ss:$16 sps:$4 sm:$0xff]   ;;  %v1275_v24 = vld [vmem:[%s1612_s3 + $0xa8] ss:$16 sps:$4 sm:$0xff]  }
  0x45   : > { %v1276_v25 = vld [vmem:[%s1612_s3 + $0xc4] ss:$16 sps:$4 sm:$0xff]   ;;  %v1278_v26 = vld [vmem:[%s1612_s3 + $0xcc] ss:$16 sps:$4 sm:$0xff]   ;;  %v1280_v27 = vld [vmem:[%s1612_s3 + $0xc0] ss:$16 sps:$4 sm:$0xff]  }
  0x46   : > { %v1281_v28 = vld [vmem:[%s1612_s3 + $0xc8] ss:$16 sps:$4 sm:$0xff]   ;;  %v1282_v29 = vld [vmem:[%s1612_s3 + $0xe4] ss:$16 sps:$4 sm:$0xff]   ;;  %v1284_v30 = vld [vmem:[%s1612_s3 + $0xec] ss:$16 sps:$4 sm:$0xff]  }
  0x47   : > { %792 = vmatpush1.bf16.msra.mxu0 %v1256_v11  ;;  %874 = vmatpush1.bf16.msra.mxu1 %v1257_v12  ;;  %v1286_v31 = vld [vmem:[%s1612_s3 + $0xe0] ss:$16 sps:$4 sm:$0xff]   ;;  %v1287_v32 = vld [vmem:[%s1612_s3 + $0xe8] ss:$16 sps:$4 sm:$0xff]   ;;  %v1288_v33 = vld [vmem:[%s1612_s3 + $0x104] ss:$16 sps:$4 sm:$0xff]  }
  0x48   : > { %793 = vmatprep.subr.bf16.mxu0 %v1258_v13  ;;  %875 = vmatprep.subr.bf16.mxu1 %v1260_v14  ;;  %v1290_v34 = vld [vmem:[%s1612_s3 + $0x10c] ss:$16 sps:$4 sm:$0xff]   ;;  %v1292_v35 = vld [vmem:[%s1612_s3 + $0x100] ss:$16 sps:$4 sm:$0xff]   ;;  %v1293_v36 = vld [vmem:[%s1612_s3 + $0x108] ss:$16 sps:$4 sm:$0xff]  }
  0x49   : > { %v1294_v37 = vld [vmem:[%s1612_s3 + $0x124] ss:$16 sps:$4 sm:$0xff]   ;;  %v1296_v38 = vld [vmem:[%s1612_s3 + $0x12c] ss:$16 sps:$4 sm:$0xff]   ;;  %v1500_v39 = vmov 1966171168  }
  0x4a   : > { %v290_v40 = vunpack.c.l.s4 %v1500_v39  ;;  %v1298_v42 = vld [vmem:[%s1612_s3 + $0x120] ss:$16 sps:$4 sm:$0xff]   ;;  %v1299_v43 = vld [vmem:[%s1612_s3 + $0x128] ss:$16 sps:$4 sm:$0xff]   ;;  %v1300_v44 = vld [vmem:[%s1612_s3 + $0x144] ss:$16 sps:$4 sm:$0xff]  }
  0x4b   : > { %794 = vmatpush1.bf16.msra.mxu0 %v1262_v15  ;;  %876 = vmatpush1.bf16.msra.mxu1 %v1263_v16  ;;  %s181_s19 = smul.u32 3, %s1486_s12  ;;  %v1302_v45 = vld [vmem:[%s1612_s3 + $0x14c] ss:$16 sps:$4 sm:$0xff]   ;;  %v1662_v47 = vshrl.u32 %v292_v41, 7  ;;  %v1304_v48 = vld [vmem:[%s1612_s3 + $0x140] ss:$16 sps:$4 sm:$0xff]  }
  0x4c   : > { %795 = vmatprep.subr.bf16.mxu0 %v1264_v17  ;;  %877 = vmatprep.subr.bf16.mxu1 %v1266_v18  ;;  %v291_v46 = vunpack.c.0.s8 %v290_v40  ;;  %v1305_v49 = vld [vmem:[%s1612_s3 + $0x148] ss:$16 sps:$4 sm:$0xff]   ;;  %v1306_v50 = vld [vmem:[%s1612_s3 + $0x164] ss:$16 sps:$4 sm:$0xff]   ;;  %v1308_v51 = vld [vmem:[%s1612_s3 + $0x16c] ss:$16 sps:$4 sm:$0xff]  }
  0x4d   : > { %s182_s29 = scalar_lea.vmem %s1775_s0, %s181_s19  ;;  %v1310_v54 = vld [vmem:[%s1612_s3 + $0x160] ss:$16 sps:$4 sm:$0xff]   ;;  %v1311_v55 = vld [vmem:[%s1612_s3 + $0x168] ss:$16 sps:$4 sm:$0xff]   ;;  %v1312_v57 = vld [vmem:[%s1612_s3 + $0x184] ss:$16 sps:$4 sm:$0xff]  }
  0x4e   : > { %v294_v52 = vsub.s32 %v291_v46, %v1662_v47  ;;  %v1058_v53 = vld.sshfl [vmem:[%s182_s29] sm:$0x13 pattern:$0x75316420]  ;;  %v1314_v58 = vld [vmem:[%s1612_s3 + $0x18c] ss:$16 sps:$4 sm:$0xff]  }
  0x4f   : > { %796 = vmatpush1.bf16.msra.mxu0 %v1268_v19  ;;  %878 = vmatpush1.bf16.msra.mxu1 %v1269_v20  ;;  %v288_v56 = vcombine.high %v1058_v53, %v1058_v53  ;;  %v1316_v60 = vld [vmem:[%s1612_s3 + $0x180] ss:$16 sps:$4 sm:$0xff]   ;;  %v1317_v61 = vld [vmem:[%s1612_s3 + $0x188] ss:$16 sps:$4 sm:$0xff]   ;;  %v1318_v62 = vld [vmem:[%s1612_s3 + $0x1a4] ss:$16 sps:$4 sm:$0xff]  }
  0x50   : > { %797 = vmatprep.subr.bf16.mxu0 %v1270_v21  ;;  %879 = vmatprep.subr.bf16.mxu1 %v1272_v22  ;;  %v1320_v63 = vld [vmem:[%s1612_s3 + $0x1ac] ss:$16 sps:$4 sm:$0xff]   ;;  %v1322_v0 = vld [vmem:[%s1612_s3 + $0x1a0] ss:$16 sps:$4 sm:$0xff]   ;;  %v1323_v1 = vld [vmem:[%s1612_s3 + $0x1a8] ss:$16 sps:$4 sm:$0xff]   ;;  %v1692_v12 = vrot.slane %v1058_v53, %v294_v52 }
  0x51   : > { %v302_v59 = vrot.slane %v288_v56, %v294_v52  ;;  %v1324_v2 = vld [vmem:[%s1612_s3 + $0x1c4] ss:$16 sps:$4 sm:$0xff]   ;;  %v1326_v3 = vld [vmem:[%s1612_s3 + $0x1cc] ss:$16 sps:$4 sm:$0xff]   ;;  %v1328_v4 = vld [vmem:[%s1612_s3 + $0x1c0] ss:$16 sps:$4 sm:$0xff]  }
  0x52   : > { %v1329_v5 = vld [vmem:[%s1612_s3 + $0x1c8] ss:$16 sps:$4 sm:$0xff]   ;;  %v1330_v6 = vld [vmem:[%s1612_s3 + $0x1e4] ss:$16 sps:$4 sm:$0xff]   ;;  %v1332_v7 = vld [vmem:[%s1612_s3 + $0x1ec] ss:$16 sps:$4 sm:$0xff]  }
  0x53   : > { %798 = vmatpush1.bf16.msra.mxu0 %v1274_v23  ;;  %880 = vmatpush1.bf16.msra.mxu1 %v1275_v24  ;;  %v1334_v8 = vld [vmem:[%s1612_s3 + $0x1e0] ss:$16 sps:$4 sm:$0xff]   ;;  %v1335_v9 = vld [vmem:[%s1612_s3 + $0x1e8] ss:$16 sps:$4 sm:$0xff]   ;;  %v1338_v10 = vld [vmem:[%s1612_s3 + $0x204] ss:$16 sps:$4 sm:$0xff]  }
  0x54   : > { %799 = vmatprep.subr.bf16.mxu0 %v1276_v25  ;;  %881 = vmatprep.subr.bf16.mxu1 %v1278_v26  ;;  %v1341_v11 = vld [vmem:[%s1612_s3 + $0x20c] ss:$16 sps:$4 sm:$0xff]   ;;  %v1336_v13 = vld [vmem:[%s1612_s3 + $0x200] ss:$16 sps:$4 sm:$0xff]   ;;  %v1339_v14 = vld [vmem:[%s1612_s3 + $0x208] ss:$16 sps:$4 sm:$0xff]  }
  0x55   : > { %819 = vmatprep.mubr.bf16.mxu0 %v302_v59  ;;  %901 = vmatprep.mubr.bf16.mxu1 %v302_v59  ;;  %v1344_v15 = vld [vmem:[%s1612_s3 + $0x224] ss:$16 sps:$4 sm:$0xff]   ;;  %v1347_v16 = vld [vmem:[%s1612_s3 + $0x22c] ss:$16 sps:$4 sm:$0xff]   ;;  %v1342_v17 = vld [vmem:[%s1612_s3 + $0x220] ss:$16 sps:$4 sm:$0xff]  }
  0x56   : > { %v1345_v18 = vld [vmem:[%s1612_s3 + $0x228] ss:$16 sps:$4 sm:$0xff]   ;;  %v1350_v19 = vld [vmem:[%s1612_s3 + $0x244] ss:$16 sps:$4 sm:$0xff]   ;;  %v1353_v20 = vld [vmem:[%s1612_s3 + $0x24c] ss:$16 sps:$4 sm:$0xff]  }
  0x57   : > { %800 = vmatpush1.bf16.msra.mxu0 %v1280_v27  ;;  %882 = vmatpush1.bf16.msra.mxu1 %v1281_v28  ;;  %v1501_v21 = vmov 0   ;;  %v1348_v22 = vld [vmem:[%s1612_s3 + $0x240] ss:$16 sps:$4 sm:$0xff]   ;;  %v1351_v23 = vld [vmem:[%s1612_s3 + $0x248] ss:$16 sps:$4 sm:$0xff]   ;;  %s1503_s12 = smov [#allocation5]  }
  0x58   : > { %801 = vmatprep.subr.bf16.mxu0 %v1282_v29  ;;  %883 = vmatprep.subr.bf16.mxu1 %v1284_v30  ;;  %v1356_v24 = vld [vmem:[%s1612_s3 + $0x264] ss:$16 sps:$4 sm:$0xff]   ;;  %v1359_v25 = vld [vmem:[%s1612_s3 + $0x26c] ss:$16 sps:$4 sm:$0xff]   ;;  %v1354_v26 = vld [vmem:[%s1612_s3 + $0x260] ss:$16 sps:$4 sm:$0xff]  }
  0x59   : > { %v1357_v27 = vld [vmem:[%s1612_s3 + $0x268] ss:$16 sps:$4 sm:$0xff]   ;;  %v1362_v28 = vld [vmem:[%s1612_s3 + $0x284] ss:$16 sps:$4 sm:$0xff]   ;;  %v1365_v29 = vld [vmem:[%s1612_s3 + $0x28c] ss:$16 sps:$4 sm:$0xff]  }
  0x5a   : > { %v1360_v30 = vld [vmem:[%s1612_s3 + $0x280] ss:$16 sps:$4 sm:$0xff]   ;;  %v1375_v39 = vld [vmem:[%s1612_s3 + $0x2c8] ss:$16 sps:$4 sm:$0xff]   ;;  %v1380_v40 = vld [vmem:[%s1612_s3 + $0x2e4] ss:$16 sps:$4 sm:$0xff]  }
  0x5b   : > { %802 = vmatpush1.bf16.msra.mxu0 %v1286_v31  ;;  %884 = vmatpush1.bf16.msra.mxu1 %v1287_v32  ;;  %v1363_v31 = vld [vmem:[%s1612_s3 + $0x288] ss:$16 sps:$4 sm:$0xff]   ;;  %v1368_v32 = vld [vmem:[%s1612_s3 + $0x2a4] ss:$16 sps:$4 sm:$0xff]   ;;  %v1383_v41 = vld [vmem:[%s1612_s3 + $0x2ec] ss:$16 sps:$4 sm:$0xff]  }
  0x5c   : > { %803 = vmatprep.subr.bf16.mxu0 %v1288_v33  ;;  %885 = vmatprep.subr.bf16.mxu1 %v1290_v34  ;;  %v1371_v33 = vld [vmem:[%s1612_s3 + $0x2ac] ss:$16 sps:$4 sm:$0xff]   ;;  %v1366_v34 = vld [vmem:[%s1612_s3 + $0x2a0] ss:$16 sps:$4 sm:$0xff]   ;;  %s985_s30 = sshll.u32 %s1503_s12, 4  ;;  %p1731_p7 = scmp.eq.s32.totalorder %s1051_s15, 1  ;;  %s986_s30 = int_to_ptr.vmem [resolvable:$true] %s985_s30 }
  0x5d   : > { %s1414_s5 = scalar_lea.vmem %s986_s30, 128  ;;  %p1421_p8 = scmp.lt.s32.totalorder %s986_s30, %s986_s30 }
  0x5e   : > { %p1415_p9 = scmp.ne.s32.totalorder %s986_s30, %s1414_s5  ;;  %p1422_p10 = scmp.lt.s32.totalorder %s1414_s5, %s1414_s5 }
  0x5f   : > { %804 = vmatpush1.bf16.msra.mxu0 %v1292_v35  ;;  %886 = vmatpush1.bf16.msra.mxu1 %v1293_v36  ;;  %v1369_v35 = vld [vmem:[%s1612_s3 + $0x2a8] ss:$16 sps:$4 sm:$0xff]   ;;  %v1374_v36 = vld [vmem:[%s1612_s3 + $0x2c4] ss:$16 sps:$4 sm:$0xff]  }
  0x60   : > { %805 = vmatprep.subr.bf16.mxu0 %v1294_v37  ;;  %887 = vmatprep.subr.bf16.mxu1 %v1296_v38  ;;  %v1377_v37 = vld [vmem:[%s1612_s3 + $0x2cc] ss:$16 sps:$4 sm:$0xff]   ;;  %v1372_v38 = vld [vmem:[%s1612_s3 + $0x2c0] ss:$16 sps:$4 sm:$0xff]   ;;  %p1416_p5 = pnand %p1415_p9, %p1731_p7  ;;  %p1423_p12 = por %p1422_p10, %p1421_p8 }
  0x62   : > { %p1417_p6 = pneg %p1416_p5 }
  0x63   : > { %806 = vmatpush1.bf16.msra.mxu0 %v1298_v42  ;;  %888 = vmatpush1.bf16.msra.mxu1 %v1299_v43  ;;  %v1378_v42 = vld [vmem:[%s1612_s3 + $0x2e0] ss:$16 sps:$4 sm:$0xff]   ;;  %v1381_v43 = vld [vmem:[%s1612_s3 + $0x2e8] ss:$16 sps:$4 sm:$0xff]  }
  0x64   : > { %807 = vmatprep.subr.bf16.mxu0 %v1300_v44  ;;  %889 = vmatprep.subr.bf16.mxu1 %v1302_v45  ;;  %v303_v44 = vcombine.high %v1692_v12, %v1692_v12  ;;  %v1502_v45 = vmov 1983009808   ;;  %p1424_p0 = pnand %p1423_p12, %p1417_p6 }
  0x65   : > { %v958_v46 = vunpack.c.l.s4 %v1502_v45 }
  0x67   : > { %808 = vmatpush1.bf16.msra.mxu0 %v1304_v48  ;;  %890 = vmatpush1.bf16.msra.mxu1 %v1305_v49  ;;  %v959_v48 = vunpack.c.0.s8 %v958_v46 }
  0x68   : > { %809 = vmatprep.subr.bf16.mxu0 %v1306_v50  ;;  %891 = vmatprep.subr.bf16.mxu1 %v1308_v51 }
  0x69   : > { %v962_v51 = vsub.s32 %v959_v48, %v1662_v47 }
  0x6b   : > { %810 = vmatpush1.bf16.msra.mxu0 %v1310_v54  ;;  %892 = vmatpush1.bf16.msra.mxu1 %v1311_v55 }
  0x6c   : > { %811 = vmatprep.subr.bf16.mxu0 %v1312_v57  ;;  %893 = vmatprep.subr.bf16.mxu1 %v1314_v58 }
  0x6f   : > { %812 = vmatpush1.bf16.msra.mxu0 %v1316_v60  ;;  %894 = vmatpush1.bf16.msra.mxu1 %v1317_v61 }
  0x70   : > { %813 = vmatprep.subr.bf16.mxu0 %v1318_v62  ;;  %895 = vmatprep.subr.bf16.mxu1 %v1320_v63  ;;  %v180_v62 = vld [vmem:[#allocation5] sm:$0xff] }
  0x73   : > { %814 = vmatpush1.bf16.msra.mxu0 %v1322_v0  ;;  %896 = vmatpush1.bf16.msra.mxu1 %v1323_v1 }
  0x74   : > { %815 = vmatprep.subr.bf16.mxu0 %v1324_v2  ;;  %897 = vmatprep.subr.bf16.mxu1 %v1326_v3 }
  0x77   : > { %816 = vmatpush1.bf16.msra.mxu0 %v1328_v4  ;;  %898 = vmatpush1.bf16.msra.mxu1 %v1329_v5 }
  0x78   : > { %817 = vmatprep.subr.bf16.mxu0 %v1330_v6  ;;  %899 = vmatprep.subr.bf16.mxu1 %v1332_v7 }
  0x7b   : > { %818 = vmatpush1.bf16.msra.mxu0 %v1334_v8  ;;  %900 = vmatpush1.bf16.msra.mxu1 %v1335_v9 }
  0x7c   : > { %828 = vmatprep.subr.bf16.mxu0 %v1338_v10  ;;  %910 = vmatprep.subr.bf16.mxu1 %v1341_v11 }
  0x7e   : > { %820 = vmatmul.mubr.bf16.vlgmr.msra.gmra.mrb[0].mxu0 %v1692_v12  ;;  %902 = vmatmul.mubr.bf16.vlgmr.msra.gmra.mrb[0].mxu1 %v1692_v12 }
  0x7f   : > { %829 = vmatpush1.bf16.msra.mxu0 %v1336_v13  ;;  %911 = vmatpush1.bf16.msra.mxu1 %v1339_v14 }
  0x80   : > { %830 = vmatprep.subr.bf16.mxu0 %v1344_v15  ;;  %912 = vmatprep.subr.bf16.mxu1 %v1347_v16 }
  0x81   : > { %860 = vmatprep.mubr.bf16.mxu0 %v1501_v21  ;;  %942 = vmatprep.mubr.bf16.mxu1 %v1501_v21 }
  0x83   : > { %831 = vmatpush1.bf16.msra.mxu0 %v1342_v17  ;;  %913 = vmatpush1.bf16.msra.mxu1 %v1345_v18 }
  0x84   : > { %832 = vmatprep.subr.bf16.mxu0 %v1350_v19  ;;  %914 = vmatprep.subr.bf16.mxu1 %v1353_v20 }
  0x87   : > { %833 = vmatpush1.bf16.msra.mxu0 %v1348_v22  ;;  %915 = vmatpush1.bf16.msra.mxu1 %v1351_v23 }
  0x88   : > { %834 = vmatprep.subr.bf16.mxu0 %v1356_v24  ;;  %916 = vmatprep.subr.bf16.mxu1 %v1359_v25 }
  0x8b   : > { %835 = vmatpush1.bf16.msra.mxu0 %v1354_v26  ;;  %917 = vmatpush1.bf16.msra.mxu1 %v1357_v27 }
  0x8c   : > { %836 = vmatprep.subr.bf16.mxu0 %v1362_v28  ;;  %918 = vmatprep.subr.bf16.mxu1 %v1365_v29 }
  0x8f   : > { %837 = vmatpush1.bf16.msra.mxu0 %v1360_v30  ;;  %919 = vmatpush1.bf16.msra.mxu1 %v1363_v31 }
  0x90   : > { %838 = vmatprep.subr.bf16.mxu0 %v1368_v32  ;;  %920 = vmatprep.subr.bf16.mxu1 %v1371_v33 }
  0x93   : > { %839 = vmatpush1.bf16.msra.mxu0 %v1366_v34  ;;  %921 = vmatpush1.bf16.msra.mxu1 %v1369_v35 }
  0x94   : > { %840 = vmatprep.subr.bf16.mxu0 %v1374_v36  ;;  %922 = vmatprep.subr.bf16.mxu1 %v1377_v37 }
  0x97   : > { %841 = vmatpush1.bf16.msra.mxu0 %v1372_v38  ;;  %923 = vmatpush1.bf16.msra.mxu1 %v1375_v39 }
  0x98   : > { %842 = vmatprep.subr.bf16.mxu0 %v1380_v40  ;;  %924 = vmatprep.subr.bf16.mxu1 %v1383_v41 }
  0x9b   : > { %843 = vmatpush1.bf16.msra.mxu0 %v1378_v42  ;;  %925 = vmatpush1.bf16.msra.mxu1 %v1381_v43 }
  0x9e   : > { %861 = vmatmul.mubr.bf16.vlgmr.msra.gmra.mrb[0].mxu0 %v303_v44  ;;  %943 = vmatmul.mubr.bf16.vlgmr.msra.gmra.mrb[0].mxu1 %v303_v44 }
 0x171   : > { %v862_v49 = vpop.f32.mrb[0].mxu0  ;;  %v944_v50 = vpop.f32.mrb[0].mxu1 }
 0x172   : > { %v864_v52 = vpop.f32.mrb[1].mxu0  ;;  %v946_v53 = vpop.f32.mrb[1].mxu1 }
 0x173   : > { %v955_v54 = vcombine.low %v862_v49, %v864_v52  ;;  %v956_v55 = vcombine.low %v944_v50, %v946_v53  ;;  %v866_v56 = vpop.f32.mrb[2].mxu0  ;;  %v948_v57 = vpop.f32.mrb[2].mxu1 }
 0x174   : > { %v867_v58 = vpop.f32.mrb[3].mxu0  ;;  %v949_v59 = vpop.f32.mrb[3].mxu1 }
 0x175   : > { %v963_v60 = vrot.slane %v955_v54, %v962_v51  ;;  %v970_v61 = vrot.slane %v956_v55, %v962_v51 }
 0x177   : > { %v971_v63 = vcombine.low %v963_v60, %v970_v61 }
 0x179   : > { %v973_v47 = vadd.f32 %v971_v63, %v180_v62 }
 0x17b   : > { %974 = vst [vmem:[#allocation5] sm:$0xff] %v973_v47 }
 0x17c   : > { %1427 = shalt.err (!%p1424_p0)
}
 0x17d   : > { %s1428_s15 = scalar_lea.hbm %s1777_s2, 128 }
 0x17e   : > { %p1429_p1 = scmp.ne.s32.totalorder %s1777_s2, %s1428_s15  ;;  %p1434_p13 = scmp.lt.u32.totalorder %s1428_s15, %s1777_s2 }
 0x180   : > { %p1430_p2 = pnand %p1429_p1, %p1731_p7 }
 0x182   : > { %p1431_p11 = pneg %p1430_p2 }
 0x184   : > { %p1436_p3 = pnand %p1434_p13, %p1431_p11 }
 0x186   : > { %1439 = shalt.err (!%p1436_p3)
}
 0x187   : > { %1175 = dma.vmem_to_hbm [thread:$0]  (%p1731_p7), %s986_s30, 128, %s1777_s2, [#allocation4]  }
 0x188   : > { %1469 = dma.done.wait (%p1731_p7), [#allocation4], 128  }
 0x189   : > { %1471 = vsyncadd (%p1731_p7), [#allocation4], 4294967168 }
 0x18a PF: > { %s16_s14 = sadd.s32 1, %s1494_s14   ;;  %s1781_s9 = smov %s1478_s10 }
 0x18b   : > { %p13_p4 = scmp.ge.s32.totalorder %s16_s14, 4   ;;  %s1782_s10 = smov %s1482_s11 }
 0x18c   : > { %s1783_s11 = smov %s1566_s20  ;;  %s1784_s12 = smov %s1490_s13 }
 0x18d   : > { %s1785_s13 = smov %s1787_s16  ;;  %15 = sbr.rel (!%p13_p4) target bundleno = 5 (0x5), region = 71 }
 0x194   :  { %998 = vsyncpa [#allocation3], 1 }
 0x195   :  { %1000 = vsyncpa [#allocation3 + $0x1], 1 }
 0x196   :  { %1001 = vsyncpa [#allocation4], 1 }
 0x197   :  { %1003 = vsyncpa [#allocation4 + $0x1], 1 }

</bundles_post_ra>
